<compile_context>
chip_gen: v7x
topology: tpu7x:2x2x1
jax: 0.10.0
libtpu: 0.0.40
codegen_flags: <defaults>
</compile_context>

<pallas_src>
import functools

import jax
import jax.numpy as jnp
from jax.experimental import pallas as pl
from jax.experimental.pallas import tpu as pltpu


def _round_up(a: int, b: int) -> int:
    return ((a + b - 1) // b) * b


def _cdiv(a: int, b: int) -> int:
    return (a + b - 1) // b


def _choose_tiling(M: int, tm_target: int):
    """Pick (tm_eff, Mp, steps): tm_eff a multiple of the layout granule,
    Mp = tm_eff * steps >= M, and steps even (>=2) when possible so the
    'parallel' token axis splits across the two v7x TensorCores."""
    g = 512 if M >= 512 else 16          # 16 = bf16 packed sublane granule
    n_gran = _cdiv(M, g)
    tgt_gran = max(1, tm_target // g)
    steps = _cdiv(n_gran, tgt_gran)
    if steps > 1 and steps % 2:
        steps += 1                       # even split across 2 TCs (v7x)
    gran_per_step = _cdiv(n_gran, steps)
    tm_eff = g * gran_per_step
    Mp = tm_eff * steps
    return tm_eff, Mp, steps


def _patch_embed_kernel(x_ref, w_ref, p_ref, o_ref, *, use_norm: bool, eps: float):
    # x_ref: (tm, K) compute dtype; w_ref: (K, E) compute dtype (VMEM resident)
    # p_ref: (8, E) f32, rows: 0=bias, 1=gamma, 2=beta;  o_ref: (tm, E)
    acc = jnp.dot(x_ref[...], w_ref[...], preferred_element_type=jnp.float32)
    acc = acc + p_ref[0:1, :]                         # bias (f32)
    if use_norm:
        inv_e = 1.0 / float(acc.shape[-1])            # E is unpadded -> exact
        mean = jnp.sum(acc, axis=-1, keepdims=True) * inv_e
        cent = acc - mean
        var = jnp.sum(cent * cent, axis=-1, keepdims=True) * inv_e
        acc = cent * jax.lax.rsqrt(var + eps)
        acc = acc * p_ref[1:2, :] + p_ref[2:3, :]     # gamma / beta (f32)
    o_ref[...] = acc.astype(o_ref.dtype)


def _proj_pallas(patches, w_ke, params, *, out_dtype, tm, use_norm, eps):
    Mp, K = patches.shape
    E = w_ke.shape[1]
    assert Mp % tm == 0

    kernel = functools.partial(_patch_embed_kernel, use_norm=use_norm, eps=eps)

    in_b = jnp.dtype(patches.dtype).itemsize
    out_b = jnp.dtype(out_dtype).itemsize
    cost = pl.CostEstimate(
        flops=2 * Mp * K * E,
        transcendentals=Mp if use_norm else 0,
        bytes_accessed=(Mp * K * in_b + K * E * in_b + 8 * E * 4
                        + Mp * E * out_b),
    )

    return pl.pallas_call(
        kernel,
        out_shape=jax.ShapeDtypeStruct((Mp, E), out_dtype),
        grid_spec=pltpu.PrefetchScalarGridSpec(
            num_scalar_prefetch=0,
            grid=(Mp // tm,),
            in_specs=[
                pl.BlockSpec((tm, K), lambda i: (i, 0)),   # streamed patches
                pl.BlockSpec((K, E), lambda i: (0, 0)),    # resident weight
                pl.BlockSpec((8, E), lambda i: (0, 0)),    # bias/gamma/beta
            ],
            out_specs=pl.BlockSpec((tm, E), lambda i: (i, 0)),
        ),
        compiler_params=pltpu.CompilerParams(
            dimension_semantics=("parallel",),
            vmem_limit_bytes=32 * 1024 * 1024,
        ),
        cost_estimate=cost,
    )(patches, w_ke, params)


def patch_embed_3d(x, weight, bias, gamma=None, beta=None, *,
                   patch_size=(2, 4, 4), eps=1e-5, tm=8192,
                   compute_dtype=jnp.bfloat16, out_dtype=None,
                   channels_last=False):
    """x: (N, C, D, H, W).  weight: (E, C, pd, ph, pw).  bias: (E,).
    gamma/beta (E,) enable the optional LayerNorm (norm_layer=nn.LayerNorm).
    Matmul inputs stream in `compute_dtype` (bf16) with f32 accumulation;
    bias/LayerNorm math is f32.  Default output matches PyTorch
    (N, E, D', H', W'); channels_last=True returns (N, D', H', W', E) and
    skips the final layout transpose."""
    pd, ph, pw = patch_size
    N, C, D, H, W = x.shape
    E = weight.shape[0]
    out_dtype = x.dtype if out_dtype is None else out_dtype

    # Cast BEFORE padding so the pad + patch-extraction glue runs in bf16
    # (half the glue HBM traffic); accumulation stays f32 in the kernel.
    xc = x.astype(compute_dtype)
    pad_d, pad_h, pad_w = (-D) % pd, (-H) % ph, (-W) % pw
    if pad_d or pad_h or pad_w:
        xc = jnp.pad(xc, ((0, 0), (0, 0), (0, pad_d), (0, pad_h), (0, pad_w)))
    Dp, Hp, Wp = (D + pad_d) // pd, (H + pad_h) // ph, (W + pad_w) // pw

    # --- patch extraction: (N,C,D,H,W) -> (M, K), K ordered (C,pd,ph,pw) -----
    # TODO(synk): fuse this gather into the kernel (grid over (token-tile,
    # (c,kd,kh)) or manual strided DMAs) to drop the materialized patches slab.
    K = C * pd * ph * pw
    M = N * Dp * Hp * Wp
    xr = xc.reshape(N, C, Dp, pd, Hp, ph, Wp, pw)
    xr = jnp.transpose(xr, (0, 2, 4, 6, 1, 3, 5, 7))   # (N,Dp,Hp,Wp,C,pd,ph,pw)
    patches = xr.reshape(M, K)

    # --- tiling: big token tiles, VMEM-budgeted, even grid for 2 TCs ---------
    in_b = jnp.dtype(compute_dtype).itemsize
    out_b = jnp.dtype(out_dtype).itemsize
    budget = 24 * 1024 * 1024
    fixed = K * E * in_b + 8 * E * 4
    per_row = 2 * (K * in_b + E * out_b)       # double-buffered in + out rows
    tm_cap = max(512, (budget - fixed) // per_row)
    tm_eff, Mp, _ = _choose_tiling(M, int(min(tm, tm_cap)))
    if Mp != M:
        patches = jnp.pad(patches, ((0, Mp - M), (0, 0)))

    # K and E are intentionally NOT padded: full-extent block dims are legal,
    # the MXU has slack, and padding E would inflate output writeback bytes.
    w_ke = weight.reshape(E, K).T.astype(compute_dtype)        # (K, E)

    use_norm = gamma is not None
    params = jnp.zeros((8, E), jnp.float32)
    params = params.at[0].set(bias.astype(jnp.float32))
    if use_norm:
        params = params.at[1].set(gamma.astype(jnp.float32))
        params = params.at[2].set(beta.astype(jnp.float32))

    out = _proj_pallas(patches, w_ke, params, out_dtype=out_dtype,
                       tm=tm_eff, use_norm=use_norm, eps=eps)   # (Mp, E)

    out = out[:M].reshape(N, Dp, Hp, Wp, E)
    if channels_last:
        return out   # saves a full-output HBM transpose pass
    # TODO(synk): this NCDHW transpose is a pure-layout HBM round trip kept
    # only to match the PyTorch output layout; prefer channels_last=True.
    return jnp.transpose(out, (0, 4, 1, 2, 3))


def _reference(x, weight, bias, gamma, beta, *, patch_size=(2, 4, 4), eps=1e-5,
               compute_dtype=jnp.bfloat16):
    """Pure-JAX reference using the same bf16-stream / f32-accumulate math."""
    pd, ph, pw = patch_size
    N, C, D, H, W = x.shape
    E = weight.shape[0]
    x = jnp.pad(x, ((0, 0), (0, 0),
                    (0, (-D) % pd), (0, (-H) % ph), (0, (-W) % pw)))
    D2, H2, W2 = x.shape[2:]
    Dp, Hp, Wp = D2 // pd, H2 // ph, W2 // pw
    xr = x.reshape(N, C, Dp, pd, Hp, ph, Wp, pw)
    xr = jnp.transpose(xr, (0, 2, 4, 6, 1, 3, 5, 7)).reshape(N * Dp * Hp * Wp, -1)
    y = jnp.dot(xr.astype(compute_dtype),
                weight.reshape(E, -1).T.astype(compute_dtype),
                preferred_element_type=jnp.float32)
    y = y + bias.astype(jnp.float32)
    if gamma is not None:
        mu = y.mean(-1, keepdims=True)
        var = ((y - mu) ** 2).mean(-1, keepdims=True)
        y = (y - mu) * jax.lax.rsqrt(var + eps) * gamma.astype(jnp.float32) \
            + beta.astype(jnp.float32)
    y = y.reshape(N, Dp, Hp, Wp, E).transpose(0, 4, 1, 2, 3)
    return y.astype(x.dtype)


if __name__ == "__main__":
    # Small config: patch_size=(2,4,4), in_chans=4, embed_dim=32, norm=LayerNorm.
    patch_size = (2, 4, 4)
    in_chans, embed_dim = 4, 32
    N, D, H, W = 2, 16, 15, 15   # H, W not multiples of 4 -> exercises padding

    key = jax.random.PRNGKey(0)
    kx, kw, kb = jax.random.split(key, 3)
    x = jax.random.normal(kx, (N, in_chans, D, H, W), jnp.float32)
    weight = 0.05 * jax.random.normal(
        kw, (embed_dim, in_chans) + patch_size, jnp.float32)
    bias = 0.01 * jax.random.normal(kb, (embed_dim,), jnp.float32)
    gamma = jnp.ones((embed_dim,), jnp.float32)
    beta = jnp.zeros((embed_dim,), jnp.float32)

    # jit so the (bf16) pad+reshape+transpose glue fuses into a single XLA pass.
    fwd = jax.jit(functools.partial(patch_embed_3d, patch_size=patch_size))

    # With LayerNorm (the D-Former configuration).
    out = jax.block_until_ready(fwd(x, weight, bias, gamma, beta))
    ref = _reference(x, weight, bias, gamma, beta, patch_size=patch_size)
    assert out.shape == (N, embed_dim, D // 2, 16 // 4, 16 // 4), out.shape
    assert jnp.allclose(out, ref, atol=2e-3, rtol=2e-3), "mismatch (norm path)"

    # Without LayerNorm (norm_layer=None).
    out_nn = jax.block_until_ready(fwd(x, weight, bias, None, None))
    ref_nn = _reference(x, weight, bias, None, None, patch_size=patch_size)
    assert jnp.allclose(out_nn, ref_nn, atol=2e-3, rtol=2e-3), \
        "mismatch (no-norm path)"

    print("KERNEL_OK")
</pallas_src>

<mosaic_0001>
module attributes {stable_mosaic.version = 11 : i64} {
  func.func @_patch_embed_kernel(%arg0: i32, %arg1: memref<256x128xbf16, #tpu.memory_space<vmem>>, %arg2: memref<128x32xbf16, #tpu.memory_space<vmem>>, %arg3: memref<8x32xf32, #tpu.memory_space<vmem>>, %arg4: memref<256x32xf32, #tpu.memory_space<vmem>>) attributes {dimension_semantics = [#tpu.dimension_semantics<parallel>], iteration_bounds = array<i64: 1>, scalar_prefetch = 0 : i64, scratch_operands = 0 : i64, tpu.core_type = #tpu.core_type<tc>, window_params = [{transform_indices = @transform_0, window_bounds = array<i64: 256, 128>}, {pipeline_mode = #tpu.pipeline_mode<synchronous>, transform_indices = @transform_1, window_bounds = array<i64: 128, 32>}, {pipeline_mode = #tpu.pipeline_mode<synchronous>, transform_indices = @transform_2, window_bounds = array<i64: 8, 32>}, {transform_indices = @transform_3, window_bounds = array<i64: 256, 32>}]} {
    %c0 = arith.constant 0 : index
    %c0_0 = arith.constant 0 : index
    %0 = vector.load %arg1[%c0, %c0_0] : memref<256x128xbf16, #tpu.memory_space<vmem>>, vector<256x128xbf16>
    %c0_1 = arith.constant 0 : index
    %c0_2 = arith.constant 0 : index
    %1 = vector.load %arg2[%c0_1, %c0_2] : memref<128x32xbf16, #tpu.memory_space<vmem>>, vector<128x32xbf16>
    %cst = arith.constant dense<0.000000e+00> : vector<256x32xf32>
    %2 = tpu.matmul %0, %1, %cst {dimension_numbers = #tpu.dot_dimension_numbers<[1], [0], [0], [1], [0, 0, 1, 1], [], []>} : vector<256x128xbf16>, vector<128x32xbf16>, vector<256x32xf32> -> vector<256x32xf32>
    %c0_3 = arith.constant 0 : index
    %c0_4 = arith.constant 0 : index
    %3 = vector.load %arg3[%c0_3, %c0_4] : memref<8x32xf32, #tpu.memory_space<vmem>>, vector<1x32xf32>
    %4 = vector.broadcast %3 : vector<1x32xf32> to vector<256x32xf32>
    %5 = arith.addf %2, %4 : vector<256x32xf32>
    %cst_5 = arith.constant dense<0.000000e+00> : vector<256xf32>
    %6 = vector.multi_reduction <add>, %5, %cst_5 [1] : vector<256x32xf32> to vector<256xf32>
    %7 = vector.shape_cast %6 : vector<256xf32> to vector<256x1xf32>
    %cst_6 = arith.constant 3.125000e-02 : f32
    %8 = vector.broadcast %cst_6 : f32 to vector<256x1xf32>
    %9 = arith.mulf %7, %8 : vector<256x1xf32>
    %10 = vector.broadcast %9 : vector<256x1xf32> to vector<256x32xf32>
    %11 = arith.subf %5, %10 : vector<256x32xf32>
    %12 = arith.mulf %11, %11 : vector<256x32xf32>
    %cst_7 = arith.constant dense<0.000000e+00> : vector<256xf32>
    %13 = vector.multi_reduction <add>, %12, %cst_7 [1] : vector<256x32xf32> to vector<256xf32>
    %14 = vector.shape_cast %13 : vector<256xf32> to vector<256x1xf32>
    %cst_8 = arith.constant 3.125000e-02 : f32
    %15 = vector.broadcast %cst_8 : f32 to vector<256x1xf32>
    %16 = arith.mulf %14, %15 : vector<256x1xf32>
    %cst_9 = arith.constant 9.99999974E-6 : f32
    %17 = vector.broadcast %cst_9 : f32 to vector<256x1xf32>
    %18 = arith.addf %16, %17 : vector<256x1xf32>
    %19 = math.rsqrt %18 : vector<256x1xf32>
    %20 = vector.broadcast %19 : vector<256x1xf32> to vector<256x32xf32>
    %21 = arith.mulf %11, %20 : vector<256x32xf32>
    %c1 = arith.constant 1 : index
    %c0_10 = arith.constant 0 : index
    %22 = vector.load %arg3[%c1, %c0_10] : memref<8x32xf32, #tpu.memory_space<vmem>>, vector<1x32xf32>
    %23 = vector.broadcast %22 : vector<1x32xf32> to vector<256x32xf32>
    %24 = arith.mulf %21, %23 : vector<256x32xf32>
    %c2 = arith.constant 2 : index
    %c0_11 = arith.constant 0 : index
    %25 = vector.load %arg3[%c2, %c0_11] : memref<8x32xf32, #tpu.memory_space<vmem>>, vector<1x32xf32>
    %26 = vector.broadcast %25 : vector<1x32xf32> to vector<256x32xf32>
    %27 = arith.addf %24, %26 : vector<256x32xf32>
    %c0_12 = arith.constant 0 : index
    %c0_13 = arith.constant 0 : index
    %28 = vector.load %arg4[%c0_12, %c0_13] : memref<256x32xf32, #tpu.memory_space<vmem>>, vector<256x32xf32>
    tpu.vector_store %arg4[%c0_12, %c0_13], %27 {strides = array<i32>} : memref<256x32xf32, #tpu.memory_space<vmem>>, vector<256x32xf32>,
    return
  }
  func.func @transform_0(%arg0: i32) -> (i32, i32) {
    %c0_i32 = arith.constant 0 : i32
    %c0_i32_0 = arith.constant 0 : i32
    return %arg0, %c0_i32 : i32, i32
  }
  func.func @transform_1(%arg0: i32) -> (i32, i32) {
    %c0_i32 = arith.constant 0 : i32
    %c0_i32_0 = arith.constant 0 : i32
    %c0_i32_1 = arith.constant 0 : i32
    return %c0_i32, %c0_i32_0 : i32, i32
  }
  func.func @transform_2(%arg0: i32) -> (i32, i32) {
    %c0_i32 = arith.constant 0 : i32
    %c0_i32_0 = arith.constant 0 : i32
    %c0_i32_1 = arith.constant 0 : i32
    return %c0_i32, %c0_i32_0 : i32, i32
  }
  func.func @transform_3(%arg0: i32) -> (i32, i32) {
    %c0_i32 = arith.constant 0 : i32
    %c0_i32_0 = arith.constant 0 : i32
    return %arg0, %c0_i32 : i32, i32
  }
}

</mosaic_0001>

<bundles_post_ra>
// kernel: patch_embed_3d.1
= control target key start
LH: loop header
LB: loop body
LE: loop exit
PB: predicated region body
PF: predicated region fallthrough
CT: control target
= control target key end

     0   :  { %s1745_s0 = inlined_call_operand.vmem [shape: bf16[256,128], index: 0, kind: input, shape index: {}]   ;;  %s1746_s1 = inlined_call_operand.vmem [shape: bf16[128,32], index: 1, kind: input, shape index: {}]   ;;  %s1747_s2 = inlined_call_operand.vmem [shape: f32[8,32], index: 2, kind: input, shape index: {}]   ;;  %s1748_s3 = inlined_call_operand.hbm [shape: f32[256,32], index: 3, kind: output, shape index: {}]  }
   0x1   :  { %v1031_v0 = vld [vmem:[%s1746_s1] sm:$0xff]   ;;  %v1032_v1 = vld [vmem:[%s1746_s1 + $0x8] sm:$0xff]   ;;  %v1033_v2 = vld [vmem:[%s1746_s1 + $0x10] sm:$0xff]  }
   0x2   :  { %964 = vmatprep.subr.bf16.mxu0 %v1031_v0  ;;  %1012 = vmatprep.subr.bf16.mxu1 %v1031_v0  ;;  %v1034_v3 = vld [vmem:[%s1746_s1 + $0x18] sm:$0xff]   ;;  %v1039_v4 = vld [vmem:[%s1745_s0] sm:$0xff]   ;;  %v1036_v7 = vld [vmem:[%s1746_s1 + $0x28] sm:$0xff]  }
   0x3   :  { %965 = vmatpush3.bf16.msra.mxu0 %v1031_v0  ;;  %1020 = vmatpush3.bf16.msra.mxu1 %v1031_v0  ;;  %v1040_v5 = vld [vmem:[%s1745_s0 + $0x40] sm:$0xff]   ;;  %v1037_v8 = vld [vmem:[%s1746_s1 + $0x30] sm:$0xff]   ;;  %v1038_v9 = vld [vmem:[%s1746_s1 + $0x38] sm:$0xff]  }
   0x4   :  { %966 = vmatprep.subr.bf16.mxu0 %v1032_v1  ;;  %1013 = vmatprep.subr.bf16.mxu1 %v1032_v1  ;;  %v1035_v6 = vld [vmem:[%s1746_s1 + $0x20] sm:$0xff]  }
   0x5   :  { %980 = vmatprep.mubr.bf16.mxu0 %v1039_v4  ;;  %996 = vmatprep.mubr.bf16.mxu1 %v1040_v5 }
   0x7   :  { %967 = vmatpush3.bf16.msra.mxu0 %v1032_v1  ;;  %1021 = vmatpush3.bf16.msra.mxu1 %v1032_v1 }
   0x8   :  { %968 = vmatprep.subr.bf16.mxu0 %v1033_v2  ;;  %1014 = vmatprep.subr.bf16.mxu1 %v1033_v2 }
   0xb   :  { %969 = vmatpush3.bf16.msra.mxu0 %v1033_v2  ;;  %1022 = vmatpush3.bf16.msra.mxu1 %v1033_v2 }
   0xc   :  { %970 = vmatprep.subr.bf16.mxu0 %v1034_v3  ;;  %1015 = vmatprep.subr.bf16.mxu1 %v1034_v3 }
   0xf   :  { %971 = vmatpush3.bf16.msra.mxu0 %v1034_v3  ;;  %1023 = vmatpush3.bf16.msra.mxu1 %v1034_v3 }
  0x10   :  { %972 = vmatprep.subr.bf16.mxu0 %v1035_v6  ;;  %1016 = vmatprep.subr.bf16.mxu1 %v1035_v6 }
  0x13   :  { %973 = vmatpush3.bf16.msra.mxu0 %v1035_v6  ;;  %1024 = vmatpush3.bf16.msra.mxu1 %v1035_v6 }
  0x14   :  { %974 = vmatprep.subr.bf16.mxu0 %v1036_v7  ;;  %1017 = vmatprep.subr.bf16.mxu1 %v1036_v7 }
  0x17   :  { %975 = vmatpush3.bf16.msra.mxu0 %v1036_v7  ;;  %1025 = vmatpush3.bf16.msra.mxu1 %v1036_v7 }
  0x18   :  { %976 = vmatprep.subr.bf16.mxu0 %v1037_v8  ;;  %1018 = vmatprep.subr.bf16.mxu1 %v1037_v8 }
  0x19   :  { %8 = vsyncpa [#allocation3], 0  ;;  %v1041_v10 = vld [vmem:[%s1745_s0 + $0x8] sm:$0xff]   ;;  %v1043_v12 = vld [vmem:[%s1745_s0 + $0x10] sm:$0xff]   ;;  %vm374_vm0 = vcmask 261120  }
  0x1a   :  { %v1042_v11 = vld [vmem:[%s1745_s0 + $0x48] sm:$0xff]   ;;  %v1045_v13 = vld [vmem:[%s1745_s0 + $0x50] sm:$0xff]   ;;  %v1044_v14 = vld [vmem:[%s1745_s0 + $0x18] sm:$0xff]  }
  0x1b   :  { %977 = vmatpush3.bf16.msra.mxu0 %v1037_v8  ;;  %1026 = vmatpush3.bf16.msra.mxu1 %v1037_v8  ;;  %v1046_v15 = vld [vmem:[%s1745_s0 + $0x58] sm:$0xff]   ;;  %v1047_v16 = vld [vmem:[%s1745_s0 + $0x20] sm:$0xff]   ;;  %v1048_v18 = vld [vmem:[%s1745_s0 + $0x28] sm:$0xff]  }
  0x1c   :  { %978 = vmatprep.subr.bf16.mxu0 %v1038_v9  ;;  %1019 = vmatprep.subr.bf16.mxu1 %v1038_v9  ;;  %v1049_v17 = vld [vmem:[%s1745_s0 + $0x60] sm:$0xff]   ;;  %v1050_v19 = vld [vmem:[%s1745_s0 + $0x68] sm:$0xff]   ;;  %v1051_v20 = vld [vmem:[%s1745_s0 + $0x30] sm:$0xff]  }
  0x1d   :  { %v1053_v21 = vld [vmem:[%s1745_s0 + $0x70] sm:$0xff]   ;;  %v1052_v22 = vld [vmem:[%s1745_s0 + $0x38] sm:$0xff]   ;;  %v1241_v24 = vld [vmem:[%s1747_s2] ss:$0 sm:$0xff] }
  0x1e   :  { %v1054_v23 = vld [vmem:[%s1745_s0 + $0x78] sm:$0xff]  }
  0x1f   :  { %979 = vmatpush3.bf16.msra.mxu0 %v1038_v9  ;;  %1027 = vmatpush3.bf16.msra.mxu1 %v1038_v9 }
  0x22   :  { %981 = vmatmul.mubr.bf16.vlgmr.msra.gmra.mrb[0].mxu0 %v1041_v10  ;;  %997 = vmatmul.mubr.bf16.vlgmr.msra.gmra.mrb[0].mxu1 %v1042_v11 }
  0x23   :  { %984 = vmatprep.mubr.bf16.mxu0 %v1043_v12  ;;  %1000 = vmatprep.mubr.bf16.mxu1 %v1045_v13 }
  0x2a   :  { %985 = vmatmul.mubr.bf16.gmra.mrb[4].mxu0 %v1044_v14  ;;  %1001 = vmatmul.mubr.bf16.gmra.mrb[4].mxu1 %v1046_v15 }
  0x2b   :  { %988 = vmatprep.mubr.bf16.mxu0 %v1047_v16  ;;  %1004 = vmatprep.mubr.bf16.mxu1 %v1049_v17 }
  0x32   :  { %989 = vmatmul.mubr.bf16.gmra.mrb[8].mxu0 %v1048_v18  ;;  %1005 = vmatmul.mubr.bf16.gmra.mrb[8].mxu1 %v1050_v19 }
  0x33   :  { %992 = vmatprep.mubr.bf16.mxu0 %v1051_v20  ;;  %1008 = vmatprep.mubr.bf16.mxu1 %v1053_v21 }
  0x3a   :  { %993 = vmatmul.mubr.bf16.gmra.mrb[12].mxu0 %v1052_v22  ;;  %1009 = vmatmul.mubr.bf16.gmra.mrb[12].mxu1 %v1054_v23 }
  0xf5   :  { %v982_v25 = vpop.f32.mrb[0].mxu0  ;;  %v998_v26 = vpop.f32.mrb[0].mxu1 }
  0xf6   :  { %v1244_v27 = vadd.f32 %v982_v25, %v1241_v24  ;;  %v1247_v28 = vadd.f32 %v998_v26, %v1241_v24  ;;  %v247_v29 = vpop.f32.mrb[1].mxu0  ;;  %v311_v30 = vpop.f32.mrb[1].mxu1 }
  0xf7   :  { %v983_v31 = vpop.f32.mrb[2].mxu0  ;;  %v999_v32 = vpop.f32.mrb[2].mxu1  ;;  %v1250_v33 = vadd.f32 %v1241_v24, %v247_v29  ;;  %v1260_v39 = vadd.f32 %v1241_v24, %v311_v30 }
  0xf8   :  { %v1253_v34 = vadd.f32 %v983_v31, %v1241_v24  ;;  %v250_v35 = vpop.f32.mrb[3].mxu0  ;;  %v314_v36 = vpop.f32.mrb[3].mxu1  ;;  %v429_v37 = vsel %vm374_vm0, %v1247_v28, 0.0  ;;  %v381_v38 = vsel %vm374_vm0, %v1244_v27, 0.0  ;;  %v1263_v40 = vadd.f32 %v999_v32, %v1241_v24 }
  0xf9   :  { %430 = vadd.xlane.f32.xlu0 %v429_v37  ;;  %382 = vadd.xlane.f32.xlu1 %v381_v38  ;;  %v375_v42 = vsel %vm374_vm0, %v1250_v33, 0.0  ;;  %v1270_v49 = vadd.f32 %v1241_v24, %v250_v35  ;;  %v1273_v50 = vadd.f32 %v1241_v24, %v314_v36  ;;  %v423_v52 = vsel %vm374_vm0, %v1260_v39, 0.0 }
  0xfa   :  { %v384_v41 = vsel %vm374_vm0, %v1253_v34, 0.0  ;;  %v432_v51 = vsel %vm374_vm0, %v1263_v40, 0.0 }
  0xfb   :  { %v426_v57 = vsel %vm374_vm0, %v1273_v50, 0.0  ;;  %v378_v58 = vsel %vm374_vm0, %v1270_v49, 0.0 }
  0xfd   :  { %385 = vadd.xlane.f32.xlu1 %v384_v41  ;;  %376 = vadd.xlane.f32.xlu0 %v375_v42  ;;  %v986_v43 = vpop.f32.mrb[4].mxu0  ;;  %v1002_v44 = vpop.f32.mrb[4].mxu1 }
  0xfe   :  { %v263_v45 = vpop.f32.mrb[5].mxu0  ;;  %v327_v46 = vpop.f32.mrb[5].mxu1  ;;  %v1280_v55 = vadd.f32 %v986_v43, %v1241_v24  ;;  %v1290_v61 = vadd.f32 %v1002_v44, %v1241_v24 }
  0xff   :  { %v987_v47 = vpop.f32.mrb[6].mxu0  ;;  %v1003_v48 = vpop.f32.mrb[6].mxu1  ;;  %v1304_v9 = vadd.f32 %v1241_v24, %v263_v45  ;;  %v1310_v17 = vadd.f32 %v1241_v24, %v327_v46 }
 0x100   :  { %v266_v53 = vpop.f32.mrb[7].mxu0  ;;  %v330_v54 = vpop.f32.mrb[7].mxu1  ;;  %v1283_v56 = vadd.f32 %v987_v47, %v1241_v24  ;;  %v1293_v62 = vadd.f32 %v1003_v48, %v1241_v24  ;;  %v393_v0 = vsel %vm374_vm0, %v1280_v55, 0.0  ;;  %v441_v8 = vsel %vm374_vm0, %v1290_v61, 0.0 }
 0x101   :  { %433 = vadd.xlane.f32.xlu1 %v432_v51  ;;  %424 = vadd.xlane.f32.xlu0 %v423_v52  ;;  %v1307_v10 = vadd.f32 %v1241_v24, %v266_v53  ;;  %v1313_v18 = vadd.f32 %v1241_v24, %v330_v54  ;;  %v387_v20 = vsel %vm374_vm0, %v1304_v9, 0.0  ;;  %v435_v29 = vsel %vm374_vm0, %v1310_v17, 0.0 }
 0x102   :  { %v396_v63 = vsel %vm374_vm0, %v1283_v56, 0.0  ;;  %v444_v7 = vsel %vm374_vm0, %v1293_v62, 0.0 }
 0x103   :  { %v390_v19 = vsel %vm374_vm0, %v1307_v10, 0.0  ;;  %v438_v26 = vsel %vm374_vm0, %v1313_v18, 0.0 }
 0x105   :  { %427 = vadd.xlane.f32.xlu1 %v426_v57  ;;  %379 = vadd.xlane.f32.xlu0 %v378_v58  ;;  %v990_v59 = vpop.f32.mrb[8].mxu0  ;;  %v1006_v60 = vpop.f32.mrb[8].mxu1 }
 0x106   :  { %v279_v1 = vpop.f32.mrb[9].mxu0  ;;  %v343_v2 = vpop.f32.mrb[9].mxu1  ;;  %v1320_v23 = vadd.f32 %v990_v59, %v1241_v24  ;;  %v1330_v30 = vadd.f32 %v1006_v60, %v1241_v24 }
 0x107   :  { %v991_v3 = vpop.f32.mrb[10].mxu0  ;;  %v1007_v4 = vpop.f32.mrb[10].mxu1  ;;  %v1344_v38 = vadd.f32 %v1241_v24, %v279_v1  ;;  %v1350_v42 = vadd.f32 %v1241_v24, %v343_v2 }
 0x108   :  { %v282_v5 = vpop.f32.mrb[11].mxu0  ;;  %v346_v6 = vpop.f32.mrb[11].mxu1  ;;  %v1323_v25 = vadd.f32 %v991_v3, %v1241_v24  ;;  %v1333_v31 = vadd.f32 %v1007_v4, %v1241_v24  ;;  %v405_v35 = vsel %vm374_vm0, %v1320_v23, 0.0  ;;  %v453_v37 = vsel %vm374_vm0, %v1330_v30, 0.0 }
 0x109   :  { %397 = vadd.xlane.f32.xlu1 %v396_v63  ;;  %394 = vadd.xlane.f32.xlu0 %v393_v0  ;;  %v1347_v41 = vadd.f32 %v1241_v24, %v282_v5  ;;  %v1353_v43 = vadd.f32 %v1241_v24, %v346_v6  ;;  %v399_v45 = vsel %vm374_vm0, %v1344_v38, 0.0  ;;  %v447_v51 = vsel %vm374_vm0, %v1350_v42, 0.0 }
 0x10a   :  { %v408_v32 = vsel %vm374_vm0, %v1323_v25, 0.0  ;;  %v456_v36 = vsel %vm374_vm0, %v1333_v31, 0.0 }
 0x10b   :  { %v402_v44 = vsel %vm374_vm0, %v1347_v41, 0.0  ;;  %v450_v48 = vsel %vm374_vm0, %v1353_v43, 0.0 }
 0x10d   :  { %445 = vadd.xlane.f32.xlu1 %v444_v7  ;;  %442 = vadd.xlane.f32.xlu0 %v441_v8  ;;  %v994_v11 = vpop.f32.mrb[12].mxu0  ;;  %v1010_v12 = vpop.f32.mrb[12].mxu1 }
 0x10e   :  { %v295_v13 = vpop.f32.mrb[13].mxu0  ;;  %v359_v14 = vpop.f32.mrb[13].mxu1  ;;  %v1360_v46 = vadd.f32 %v994_v11, %v1241_v24  ;;  %v1394_v2 = vadd.f32 %v1010_v12, %v1241_v24 }
 0x10f   :  { %v995_v15 = vpop.f32.mrb[14].mxu0  ;;  %v1011_v16 = vpop.f32.mrb[14].mxu1  ;;  %v1374_v54 = vadd.f32 %v1241_v24, %v295_v13  ;;  %v1380_v58 = vadd.f32 %v1241_v24, %v359_v14 }
 0x110   :  { %v298_v21 = vpop.f32.mrb[15].mxu0  ;;  %v362_v22 = vpop.f32.mrb[15].mxu1  ;;  %v1363_v47 = vadd.f32 %v995_v15, %v1241_v24  ;;  %v417_v53 = vsel %vm374_vm0, %v1360_v46, 0.0  ;;  %v1397_v3 = vadd.f32 %v1011_v16, %v1241_v24  ;;  %v465_v5 = vsel %vm374_vm0, %v1394_v2, 0.0 }
 0x111   :  { %391 = vadd.xlane.f32.xlu1 %v390_v19  ;;  %388 = vadd.xlane.f32.xlu0 %v387_v20  ;;  %v1377_v57 = vadd.f32 %v1241_v24, %v298_v21  ;;  %v1383_v59 = vadd.f32 %v1241_v24, %v362_v22  ;;  %v411_v63 = vsel %vm374_vm0, %v1374_v54, 0.0  ;;  %v459_v1 = vsel %vm374_vm0, %v1380_v58, 0.0 }
 0x112   :  { %v420_v52 = vsel %vm374_vm0, %v1363_v47, 0.0  ;;  %v468_v4 = vsel %vm374_vm0, %v1397_v3, 0.0 }
 0x113   :  { %v414_v60 = vsel %vm374_vm0, %v1377_v57, 0.0  ;;  %v462_v0 = vsel %vm374_vm0, %v1383_v59, 0.0 }
 0x115   :  { %439 = vadd.xlane.f32.xlu1 %v438_v26  ;;  %436 = vadd.xlane.f32.xlu0 %v435_v29 }
 0x119   :  { %409 = vadd.xlane.f32.xlu1 %v408_v32  ;;  %406 = vadd.xlane.f32.xlu0 %v405_v35 }
 0x11d   :  { %457 = vadd.xlane.f32.xlu1 %v456_v36  ;;  %454 = vadd.xlane.f32.xlu0 %v453_v37 }
 0x121   :  { %403 = vadd.xlane.f32.xlu1 %v402_v44  ;;  %400 = vadd.xlane.f32.xlu0 %v399_v45 }
 0x125   :  { %451 = vadd.xlane.f32.xlu1 %v450_v48  ;;  %448 = vadd.xlane.f32.xlu0 %v447_v51 }
 0x129   :  { %421 = vadd.xlane.f32.xlu1 %v420_v52  ;;  %418 = vadd.xlane.f32.xlu0 %v417_v53 }
 0x12d   :  { %415 = vadd.xlane.f32.xlu1 %v414_v60  ;;  %412 = vadd.xlane.f32.xlu0 %v411_v63 }
 0x131   :  { %463 = vadd.xlane.f32.xlu1 %v462_v0  ;;  %460 = vadd.xlane.f32.xlu0 %v459_v1 }
 0x135   :  { %469 = vadd.xlane.f32.xlu1 %v468_v4  ;;  %466 = vadd.xlane.f32.xlu0 %v465_v5 }
 0x186   :  { %v431_v6 = vpop.xlane.xlu0 %430  ;;  %v383_v7 = vpop.xlane.xlu1 %382 }
 0x187   :  { %v489_v8 = vmul.f32 0.03125, %v431_v6  ;;  %v473_v11 = vmul.f32 0.03125, %v383_v7 }
 0x189   :  { %v1404_v12 = vsub.f32 %v1247_v28, %v489_v8  ;;  %v1407_v24 = vsub.f32 %v1244_v27, %v473_v11 }
 0x18a   :  { %v386_v13 = vpop.xlane.xlu1 %385  ;;  %v377_v14 = vpop.xlane.xlu0 %376 }
 0x18b   :  { %v474_v15 = vmul.f32 0.03125, %v386_v13  ;;  %v471_v16 = vmul.f32 0.03125, %v377_v14  ;;  %v537_v19 = vmul.f32 %v1407_v24, %v1407_v24  ;;  %v553_v28 = vmul.f32 %v1404_v12, %v1404_v12 }
 0x18d   :  { %v1412_v20 = vsub.f32 %v1253_v34, %v474_v15  ;;  %v1415_v21 = vsub.f32 %v1250_v33, %v471_v16  ;;  %v573_v22 = vsel %vm374_vm0, %v537_v19, 0.0  ;;  %v621_v44 = vsel %vm374_vm0, %v553_v28, 0.0 }
 0x18e   :  { %v434_v27 = vpop.xlane.xlu1 %433  ;;  %574 = vadd.xlane.f32.xlu0 %v573_v22  ;;  %v425_v26 = vpop.xlane.xlu0 %424 }
 0x18f   :  { %v490_v29 = vmul.f32 0.03125, %v434_v27  ;;  %v487_v32 = vmul.f32 0.03125, %v425_v26  ;;  %v538_v35 = vmul.f32 %v1412_v20, %v1412_v20  ;;  %v535_v34 = vmul.f32 %v1415_v21, %v1415_v21 }
 0x191   :  { %v1425_v36 = vsub.f32 %v1263_v40, %v490_v29  ;;  %v1428_v33 = vsub.f32 %v1260_v39, %v487_v32  ;;  %v576_v37 = vsel %vm374_vm0, %v538_v35, 0.0  ;;  %v567_v60 = vsel %vm374_vm0, %v535_v34, 0.0 }
 0x192   :  { %v428_v45 = vpop.xlane.xlu1 %427  ;;  %577 = vadd.xlane.f32.xlu1 %v576_v37  ;;  %622 = vadd.xlane.f32.xlu0 %v621_v44  ;;  %v380_v48 = vpop.xlane.xlu0 %379 }
 0x193   :  { %v488_v51 = vmul.f32 0.03125, %v428_v45  ;;  %v472_v52 = vmul.f32 0.03125, %v380_v48  ;;  %v554_v53 = vmul.f32 %v1425_v36, %v1425_v36  ;;  %v551_v0 = vmul.f32 %v1428_v33, %v1428_v33 }
 0x195   :  { %v1436_v40 = vsub.f32 %v1273_v50, %v488_v51  ;;  %v1439_v39 = vsub.f32 %v1270_v49, %v472_v52  ;;  %v624_v63 = vsel %vm374_vm0, %v554_v53, 0.0  ;;  %v615_v11 = vsel %vm374_vm0, %v551_v0, 0.0 }
 0x196   :  { %v398_v1 = vpop.xlane.xlu1 %397  ;;  %625 = vadd.xlane.f32.xlu1 %v624_v63  ;;  %568 = vadd.xlane.f32.xlu0 %v567_v60  ;;  %v395_v4 = vpop.xlane.xlu0 %394 }
 0x197   :  { %v478_v5 = vmul.f32 0.03125, %v398_v1  ;;  %v477_v6 = vmul.f32 0.03125, %v395_v4  ;;  %v536_v7 = vmul.f32 %v1439_v39, %v1439_v39  ;;  %v552_v50 = vmul.f32 %v1436_v40, %v1436_v40 }
 0x199   :  { %v1449_v49 = vsub.f32 %v1283_v56, %v478_v5  ;;  %v1452_v8 = vsub.f32 %v1280_v55, %v477_v6  ;;  %v570_v13 = vsel %vm374_vm0, %v536_v7, 0.0  ;;  %v618_v28 = vsel %vm374_vm0, %v552_v50, 0.0 }
 0x19a   :  { %v446_v14 = vpop.xlane.xlu1 %445  ;;  %616 = vadd.xlane.f32.xlu0 %v615_v11  ;;  %571 = vadd.xlane.f32.xlu1 %v570_v13  ;;  %v443_v15 = vpop.xlane.xlu0 %442 }
 0x19b   :  { %v494_v16 = vmul.f32 0.03125, %v446_v14  ;;  %v493_v19 = vmul.f32 0.03125, %v443_v15  ;;  %v541_v22 = vmul.f32 %v1452_v8, %v1452_v8  ;;  %v542_v26 = vmul.f32 %v1449_v49, %v1449_v49 }
 0x19d   :  { %v1460_v56 = vsub.f32 %v1293_v62, %v494_v16  ;;  %v1463_v55 = vsub.f32 %v1290_v61, %v493_v19  ;;  %v585_v27 = vsel %vm374_vm0, %v541_v22, 0.0  ;;  %v588_v45 = vsel %vm374_vm0, %v542_v26, 0.0 }
 0x19e   :  { %v392_v29 = vpop.xlane.xlu1 %391  ;;  %619 = vadd.xlane.f32.xlu1 %v618_v28  ;;  %586 = vadd.xlane.f32.xlu0 %v585_v27  ;;  %v389_v32 = vpop.xlane.xlu0 %388 }
 0x19f   :  { %v476_v35 = vmul.f32 0.03125, %v392_v29  ;;  %v475_v34 = vmul.f32 0.03125, %v389_v32  ;;  %v557_v37 = vmul.f32 %v1463_v55, %v1463_v55  ;;  %v558_v62 = vmul.f32 %v1460_v56, %v1460_v56 }
 0x1a1   :  { %v1473_v61 = vsub.f32 %v1307_v10, %v476_v35  ;;  %v1476_v44 = vsub.f32 %v1304_v9, %v475_v34  ;;  %v633_v48 = vsel %vm374_vm0, %v557_v37, 0.0  ;;  %v636_v0 = vsel %vm374_vm0, %v558_v62, 0.0 }
 0x1a2   :  { %v440_v51 = vpop.xlane.xlu1 %439  ;;  %589 = vadd.xlane.f32.xlu1 %v588_v45  ;;  %634 = vadd.xlane.f32.xlu0 %v633_v48  ;;  %v437_v52 = vpop.xlane.xlu0 %436 }
 0x1a3   :  { %v492_v53 = vmul.f32 0.03125, %v440_v51  ;;  %v491_v60 = vmul.f32 0.03125, %v437_v52  ;;  %v539_v63 = vmul.f32 %v1476_v44, %v1476_v44  ;;  %v540_v4 = vmul.f32 %v1473_v61, %v1473_v61 }
 0x1a5   :  { %v1484_v10 = vsub.f32 %v1313_v18, %v492_v53  ;;  %v1487_v9 = vsub.f32 %v1310_v17, %v491_v60  ;;  %v579_v1 = vsel %vm374_vm0, %v539_v63, 0.0  ;;  %v582_v14 = vsel %vm374_vm0, %v540_v4, 0.0 }
 0x1a6   :  { %v410_v5 = vpop.xlane.xlu1 %409  ;;  %637 = vadd.xlane.f32.xlu1 %v636_v0  ;;  %580 = vadd.xlane.f32.xlu0 %v579_v1  ;;  %v407_v6 = vpop.xlane.xlu0 %406 }
 0x1a7   :  { %v482_v7 = vmul.f32 0.03125, %v410_v5  ;;  %v481_v50 = vmul.f32 0.03125, %v407_v6  ;;  %v555_v11 = vmul.f32 %v1487_v9, %v1487_v9  ;;  %v556_v18 = vmul.f32 %v1484_v10, %v1484_v10 }
 0x1a9   :  { %v1497_v17 = vsub.f32 %v1323_v25, %v482_v7  ;;  %v1500_v13 = vsub.f32 %v1320_v23, %v481_v50  ;;  %v627_v15 = vsel %vm374_vm0, %v555_v11, 0.0  ;;  %v630_v26 = vsel %vm374_vm0, %v556_v18, 0.0 }
 0x1aa   :  { %v458_v16 = vpop.xlane.xlu1 %457  ;;  %583 = vadd.xlane.f32.xlu1 %v582_v14  ;;  %628 = vadd.xlane.f32.xlu0 %v627_v15  ;;  %v455_v19 = vpop.xlane.xlu0 %454 }
 0x1ab   :  { %v498_v22 = vmul.f32 0.03125, %v458_v16  ;;  %v497_v28 = vmul.f32 0.03125, %v455_v19  ;;  %v545_v27 = vmul.f32 %v1500_v13, %v1500_v13  ;;  %v546_v32 = vmul.f32 %v1497_v17, %v1497_v17 }
 0x1ad   :  { %v1508_v25 = vsub.f32 %v1333_v31, %v498_v22  ;;  %v1511_v23 = vsub.f32 %v1330_v30, %v497_v28  ;;  %v597_v29 = vsel %vm374_vm0, %v545_v27, 0.0  ;;  %v600_v51 = vsel %vm374_vm0, %v546_v32, 0.0 }
 0x1ae   :  { %v404_v35 = vpop.xlane.xlu1 %403  ;;  %631 = vadd.xlane.f32.xlu1 %v630_v26  ;;  %598 = vadd.xlane.f32.xlu0 %v597_v29  ;;  %v401_v34 = vpop.xlane.xlu0 %400 }
 0x1af   :  { %v480_v37 = vmul.f32 0.03125, %v404_v35  ;;  %v479_v62 = vmul.f32 0.03125, %v401_v34  ;;  %v561_v45 = vmul.f32 %v1511_v23, %v1511_v23  ;;  %v562_v31 = vmul.f32 %v1508_v25, %v1508_v25 }
 0x1b1   :  { %v1521_v30 = vsub.f32 %v1347_v41, %v480_v37  ;;  %v1524_v48 = vsub.f32 %v1344_v38, %v479_v62  ;;  %v645_v52 = vsel %vm374_vm0, %v561_v45, 0.0  ;;  %v648_v4 = vsel %vm374_vm0, %v562_v31, 0.0 }
 0x1b2   :  { %v452_v53 = vpop.xlane.xlu1 %451  ;;  %601 = vadd.xlane.f32.xlu1 %v600_v51  ;;  %646 = vadd.xlane.f32.xlu0 %v645_v52  ;;  %v449_v60 = vpop.xlane.xlu0 %448 }
 0x1b3   :  { %v496_v63 = vmul.f32 0.03125, %v452_v53  ;;  %v495_v0 = vmul.f32 0.03125, %v449_v60  ;;  %v543_v1 = vmul.f32 %v1524_v48, %v1524_v48  ;;  %v544_v6 = vmul.f32 %v1521_v30, %v1521_v30 }
 0x1b5   :  { %v1532_v41 = vsub.f32 %v1353_v43, %v496_v63  ;;  %v1535_v38 = vsub.f32 %v1350_v42, %v495_v0  ;;  %v591_v5 = vsel %vm374_vm0, %v543_v1, 0.0  ;;  %v594_v16 = vsel %vm374_vm0, %v544_v6, 0.0 }
 0x1b6   :  { %v422_v7 = vpop.xlane.xlu1 %421  ;;  %649 = vadd.xlane.f32.xlu1 %v648_v4  ;;  %592 = vadd.xlane.f32.xlu0 %v591_v5  ;;  %v419_v50 = vpop.xlane.xlu0 %418 }
 0x1b7   :  { %v486_v11 = vmul.f32 0.03125, %v422_v7  ;;  %v485_v18 = vmul.f32 0.03125, %v419_v50  ;;  %v559_v14 = vmul.f32 %v1535_v38, %v1535_v38  ;;  %v560_v43 = vmul.f32 %v1532_v41, %v1532_v41 }
 0x1b9   :  { %v1545_v42 = vsub.f32 %v1363_v47, %v486_v11  ;;  %v1548_v15 = vsub.f32 %v1360_v46, %v485_v18  ;;  %v639_v19 = vsel %vm374_vm0, %v559_v14, 0.0  ;;  %v642_v32 = vsel %vm374_vm0, %v560_v43, 0.0 }
 0x1ba   :  { %v416_v22 = vpop.xlane.xlu1 %415  ;;  %595 = vadd.xlane.f32.xlu1 %v594_v16  ;;  %640 = vadd.xlane.f32.xlu0 %v639_v19  ;;  %v413_v28 = vpop.xlane.xlu0 %412 }
 0x1bb   :  { %v484_v27 = vmul.f32 0.03125, %v416_v22  ;;  %v483_v26 = vmul.f32 0.03125, %v413_v28  ;;  %v549_v29 = vmul.f32 %v1548_v15, %v1548_v15  ;;  %v550_v34 = vmul.f32 %v1545_v42, %v1545_v42 }
 0x1bd   :  { %v1556_v47 = vsub.f32 %v1377_v57, %v484_v27  ;;  %v1559_v46 = vsub.f32 %v1374_v54, %v483_v26  ;;  %v609_v35 = vsel %vm374_vm0, %v549_v29, 0.0  ;;  %v612_v53 = vsel %vm374_vm0, %v550_v34, 0.0 }
 0x1be   :  { %v464_v37 = vpop.xlane.xlu1 %463  ;;  %643 = vadd.xlane.f32.xlu1 %v642_v32  ;;  %610 = vadd.xlane.f32.xlu0 %v609_v35  ;;  %v461_v62 = vpop.xlane.xlu0 %460 }
 0x1bf   :  { %v500_v45 = vmul.f32 0.03125, %v464_v37  ;;  %v499_v31 = vmul.f32 0.03125, %v461_v62  ;;  %v547_v51 = vmul.f32 %v1559_v46, %v1559_v46  ;;  %v548_v57 = vmul.f32 %v1556_v47, %v1556_v47 }
 0x1c1   :  { %v1569_v54 = vsub.f32 %v1383_v59, %v500_v45  ;;  %v1572_v52 = vsub.f32 %v1380_v58, %v499_v31  ;;  %v603_v60 = vsel %vm374_vm0, %v547_v51, 0.0  ;;  %v606_v6 = vsel %vm374_vm0, %v548_v57, 0.0 }
 0x1c2   :  { %v470_v63 = vpop.xlane.xlu1 %469  ;;  %613 = vadd.xlane.f32.xlu1 %v612_v53  ;;  %604 = vadd.xlane.f32.xlu0 %v603_v60  ;;  %v467_v0 = vpop.xlane.xlu0 %466 }
 0x1c3   :  { %v502_v1 = vmul.f32 0.03125, %v470_v63  ;;  %v501_v4 = vmul.f32 0.03125, %v467_v0  ;;  %v563_v5 = vmul.f32 %v1572_v52, %v1572_v52  ;;  %v564_v50 = vmul.f32 %v1569_v54, %v1569_v54  ;;  %v1598_v0 = vld [vmem:[%s1747_s2 + $0x1] ss:$0 sm:$0xff] }
 0x1c5   :  { %v1580_v59 = vsub.f32 %v1397_v3, %v502_v1  ;;  %v1583_v58 = vsub.f32 %v1394_v2, %v501_v4  ;;  %v651_v7 = vsel %vm374_vm0, %v563_v5, 0.0  ;;  %v654_v18 = vsel %vm374_vm0, %v564_v50, 0.0  ;;  %v1604_v50 = vld [vmem:[%s1747_s2 + $0x2] ss:$0 sm:$0xff]  ;;  %s1143_s2 = smov [#allocation2]  }
 0x1c6   :  { %607 = vadd.xlane.f32.xlu1 %v606_v6  ;;  %652 = vadd.xlane.f32.xlu0 %v651_v7  ;;  %s902_s10 = sshll.u32 %s1143_s2, 4  ;;  %s903_s10 = int_to_ptr.vmem [resolvable:$true] %s902_s10 }
 0x1c7   :  { %v565_v11 = vmul.f32 %v1583_v58, %v1583_v58  ;;  %v566_v3 = vmul.f32 %v1580_v59, %v1580_v59  ;;  %s1119_s1 = scalar_lea.vmem %s903_s10, 4096  ;;  %p1124_p1 = scmp.lt.s32.totalorder %s903_s10, %s903_s10 }
 0x1c8   :  { %p1120_p0 = scmp.ne.s32.totalorder %s903_s10, %s1119_s1  ;;  %p1125_p2 = scmp.lt.s32.totalorder %s1119_s1, %s1119_s1 }
 0x1c9   :  { %v657_v14 = vsel %vm374_vm0, %v565_v11, 0.0  ;;  %v660_v2 = vsel %vm374_vm0, %v566_v3, 0.0 }
 0x1ca   :  { %655 = vadd.xlane.f32.xlu1 %v654_v18  ;;  %658 = vadd.xlane.f32.xlu0 %v657_v14  ;;  %p1126_p3 = por %p1125_p2, %p1124_p1 }
 0x1cc   :  { %p1127_p4 = pnand %p1126_p3, %p1120_p0 }
 0x1ce   :  { %661 = vadd.xlane.f32.xlu1 %v660_v2 }
 0x21b   :  { %v575_v43 = vpop.xlane.xlu0 %574 }
 0x21c   :  { %v665_v16 = vmul.f32 0.03125, %v575_v43 }
 0x21e   :  { %v697_v19 = vadd.f32 1e-05, %v665_v16 }
 0x21f   :  { %v578_v22 = vpop.xlane.xlu1 %577  ;;  %v623_v28 = vpop.xlane.xlu0 %622 }
 0x220   :  { %1055 = vrsqrt.f32 %v697_v19  ;;  %v666_v27 = vmul.f32 0.03125, %v578_v22  ;;  %v681_v26 = vmul.f32 0.03125, %v623_v28 }
 0x222   :  { %v698_v29 = vadd.f32 1e-05, %v666_v27  ;;  %v713_v32 = vadd.f32 1e-05, %v681_v26 }
 0x223   :  { %v626_v35 = vpop.xlane.xlu1 %625  ;;  %v569_v34 = vpop.xlane.xlu0 %568 }
 0x224   :  { %1057 = vrsqrt.f32 %v698_v29  ;;  %v682_v37 = vmul.f32 0.03125, %v626_v35  ;;  %v663_v62 = vmul.f32 0.03125, %v569_v34 }
 0x225   :  { %1059 = vrsqrt.f32 %v713_v32 }
 0x226   :  { %v714_v45 = vadd.f32 1e-05, %v682_v37  ;;  %v695_v31 = vadd.f32 1e-05, %v663_v62 }
 0x227   :  { %v572_v51 = vpop.xlane.xlu1 %571  ;;  %v617_v57 = vpop.xlane.xlu0 %616 }
 0x228   :  { %1061 = vrsqrt.f32 %v714_v45  ;;  %v664_v53 = vmul.f32 0.03125, %v572_v51  ;;  %v679_v60 = vmul.f32 0.03125, %v617_v57 }
 0x229   :  { %1063 = vrsqrt.f32 %v695_v31 }
 0x22a   :  { %v1056_v63 = vpop.eup %1055  ;;  %v696_v1 = vadd.f32 1e-05, %v664_v53  ;;  %v711_v4 = vadd.f32 1e-05, %v679_v60 }
 0x22b   :  { %v761_v5 = vmul.f32 %v1056_v63, %v1407_v24  ;;  %v620_v6 = vpop.xlane.xlu1 %619  ;;  %v587_v7 = vpop.xlane.xlu0 %586 }
 0x22c   :  { %1065 = vrsqrt.f32 %v696_v1  ;;  %v680_v11 = vmul.f32 0.03125, %v620_v6  ;;  %v669_v18 = vmul.f32 0.03125, %v587_v7 }
 0x22d   :  { %v798_v14 = vmul.f32 %v1598_v0, %v761_v5  ;;  %1067 = vrsqrt.f32 %v711_v4 }
 0x22e   :  { %v1058_v3 = vpop.eup %1057  ;;  %v712_v2 = vadd.f32 1e-05, %v680_v11  ;;  %v701_v43 = vadd.f32 1e-05, %v669_v18 }
 0x22f   :  { %v1060_v16 = vpop.eup %1059  ;;  %v835_v19 = vadd.f32 %v1604_v50, %v798_v14  ;;  %v762_v24 = vmul.f32 %v1058_v3, %v1412_v20  ;;  %v590_v22 = vpop.xlane.xlu1 %589 }
 0x230   :  { %v635_v28 = vpop.xlane.xlu0 %634  ;;  %v777_v27 = vmul.f32 %v1060_v16, %v1404_v12  ;;  %1069 = vrsqrt.f32 %v712_v2  ;;  %v670_v26 = vmul.f32 0.03125, %v590_v22 }
 0x231   :  { %v685_v29 = vmul.f32 0.03125, %v635_v28  ;;  %867 = vst.msk [vmem:[#allocation2 + $0x10] sm:$0xff] %vm374_vm0, %v835_v19  ;;  %v799_v32 = vmul.f32 %v1598_v0, %v762_v24  ;;  %1071 = vrsqrt.f32 %v701_v43 }
 0x232   :  { %v1062_v35 = vpop.eup %1061  ;;  %v814_v34 = vmul.f32 %v1598_v0, %v777_v27  ;;  %v702_v37 = vadd.f32 1e-05, %v670_v26 }
 0x233   :  { %v717_v62 = vadd.f32 1e-05, %v685_v29  ;;  %v1064_v45 = vpop.eup %1063  ;;  %v836_v20 = vadd.f32 %v1604_v50, %v799_v32  ;;  %v778_v31 = vmul.f32 %v1062_v35, %v1425_v36  ;;  %v638_v51 = vpop.xlane.xlu1 %637 }
 0x234   :  { %v581_v12 = vpop.xlane.xlu0 %580  ;;  %v851_v57 = vadd.f32 %v1604_v50, %v814_v34  ;;  %v759_v53 = vmul.f32 %v1064_v45, %v1415_v21  ;;  %1073 = vrsqrt.f32 %v702_v37  ;;  %v686_v60 = vmul.f32 0.03125, %v638_v51 }
 0x235   :  { %868 = vst.msk [vmem:[#allocation2 + $0x18] sm:$0xff] %vm374_vm0, %v836_v20  ;;  %v815_v63 = vmul.f32 %v1598_v0, %v778_v31  ;;  %1075 = vrsqrt.f32 %v717_v62  ;;  %v667_v1 = vmul.f32 0.03125, %v581_v12 }
 0x236   :  { %v1066_v4 = vpop.eup %1065  ;;  %883 = vst.msk [vmem:[#allocation2 + $0x90] sm:$0xff] %vm374_vm0, %v851_v57  ;;  %v796_v5 = vmul.f32 %v1598_v0, %v759_v53  ;;  %v718_v36 = vadd.f32 1e-05, %v686_v60 }
 0x237   :  { %v1068_v6 = vpop.eup %1067  ;;  %v852_v7 = vadd.f32 %v1604_v50, %v815_v63  ;;  %v760_v11 = vmul.f32 %v1066_v4, %v1439_v39  ;;  %v699_v21 = vadd.f32 1e-05, %v667_v1  ;;  %v584_v18 = vpop.xlane.xlu1 %583 }
 0x238   :  { %v629_v14 = vpop.xlane.xlu0 %628  ;;  %v833_v3 = vadd.f32 %v1604_v50, %v796_v5  ;;  %v775_v2 = vmul.f32 %v1068_v6, %v1428_v33  ;;  %1077 = vrsqrt.f32 %v718_v36  ;;  %v668_v43 = vmul.f32 0.03125, %v584_v18 }
 0x239   :  { %884 = vst.msk [vmem:[#allocation2 + $0x98] sm:$0xff] %vm374_vm0, %v852_v7  ;;  %v797_v16 = vmul.f32 %v1598_v0, %v760_v11  ;;  %1079 = vrsqrt.f32 %v699_v21  ;;  %v683_v19 = vmul.f32 0.03125, %v629_v14 }
 0x23a   :  { %v1070_v24 = vpop.eup %1069  ;;  %865 = vst.msk [vmem:[#allocation2] sm:$0xff] %vm374_vm0, %v833_v3  ;;  %v812_v39 = vmul.f32 %v1598_v0, %v775_v2  ;;  %v700_v22 = vadd.f32 1e-05, %v668_v43 }
 0x23b   :  { %v1072_v28 = vpop.eup %1071  ;;  %v834_v27 = vadd.f32 %v1604_v50, %v797_v16  ;;  %v776_v26 = vmul.f32 %v1070_v24, %v1436_v40  ;;  %v715_v33 = vadd.f32 1e-05, %v683_v19  ;;  %v632_v29 = vpop.xlane.xlu1 %631 }
 0x23c   :  { %v599_v32 = vpop.xlane.xlu0 %598  ;;  %v849_v35 = vadd.f32 %v1604_v50, %v812_v39  ;;  %v765_v34 = vmul.f32 %v1072_v28, %v1452_v8  ;;  %1081 = vrsqrt.f32 %v700_v22  ;;  %v684_v37 = vmul.f32 0.03125, %v632_v29 }
 0x23d   :  { %866 = vst.msk [vmem:[#allocation2 + $0x8] sm:$0xff] %vm374_vm0, %v834_v27  ;;  %v813_v62 = vmul.f32 %v1598_v0, %v776_v26  ;;  %1083 = vrsqrt.f32 %v715_v33  ;;  %v673_v45 = vmul.f32 0.03125, %v599_v32 }
 0x23e   :  { %v1074_v20 = vpop.eup %1073  ;;  %881 = vst.msk [vmem:[#allocation2 + $0x80] sm:$0xff] %vm374_vm0, %v849_v35  ;;  %v802_v40 = vmul.f32 %v1598_v0, %v765_v34  ;;  %v716_v31 = vadd.f32 1e-05, %v684_v37 }
 0x23f   :  { %v1076_v51 = vpop.eup %1075  ;;  %v850_v12 = vadd.f32 %v1604_v50, %v813_v62  ;;  %v766_v57 = vmul.f32 %v1074_v20, %v1449_v49  ;;  %v705_v8 = vadd.f32 1e-05, %v673_v45  ;;  %v602_v53 = vpop.xlane.xlu1 %601 }
 0x240   :  { %v647_v60 = vpop.xlane.xlu0 %646  ;;  %v839_v63 = vadd.f32 %v1604_v50, %v802_v40  ;;  %v781_v1 = vmul.f32 %v1076_v51, %v1463_v55  ;;  %1085 = vrsqrt.f32 %v716_v31  ;;  %v674_v4 = vmul.f32 0.03125, %v602_v53 }
 0x241   :  { %882 = vst.msk [vmem:[#allocation2 + $0x88] sm:$0xff] %vm374_vm0, %v850_v12  ;;  %v803_v5 = vmul.f32 %v1598_v0, %v766_v57  ;;  %1087 = vrsqrt.f32 %v705_v8  ;;  %v689_v36 = vmul.f32 0.03125, %v647_v60 }
 0x242   :  { %v1078_v6 = vpop.eup %1077  ;;  %871 = vst.msk [vmem:[#allocation2 + $0x30] sm:$0xff] %vm374_vm0, %v839_v63  ;;  %v818_v49 = vmul.f32 %v1598_v0, %v781_v1  ;;  %v706_v7 = vadd.f32 1e-05, %v674_v4 }
 0x243   :  { %v1080_v11 = vpop.eup %1079  ;;  %v840_v21 = vadd.f32 %v1604_v50, %v803_v5  ;;  %v782_v18 = vmul.f32 %v1078_v6, %v1460_v56  ;;  %v721_v55 = vadd.f32 1e-05, %v689_v36  ;;  %v650_v14 = vpop.xlane.xlu1 %649 }
 0x244   :  { %v593_v3 = vpop.xlane.xlu0 %592  ;;  %v855_v2 = vadd.f32 %v1604_v50, %v818_v49  ;;  %v763_v43 = vmul.f32 %v1080_v11, %v1476_v44  ;;  %1089 = vrsqrt.f32 %v706_v7  ;;  %v690_v16 = vmul.f32 0.03125, %v650_v14 }
 0x245   :  { %872 = vst.msk [vmem:[#allocation2 + $0x38] sm:$0xff] %vm374_vm0, %v840_v21  ;;  %v819_v19 = vmul.f32 %v1598_v0, %v782_v18  ;;  %1091 = vrsqrt.f32 %v721_v55  ;;  %v671_v24 = vmul.f32 0.03125, %v593_v3 }
 0x246   :  { %v1082_v39 = vpop.eup %1081  ;;  %887 = vst.msk [vmem:[#allocation2 + $0xb0] sm:$0xff] %vm374_vm0, %v855_v2  ;;  %v800_v56 = vmul.f32 %v1598_v0, %v763_v43  ;;  %v722_v22 = vadd.f32 1e-05, %v690_v16 }
 0x247   :  { %v1084_v28 = vpop.eup %1083  ;;  %v856_v27 = vadd.f32 %v1604_v50, %v819_v19  ;;  %v764_v26 = vmul.f32 %v1082_v39, %v1473_v61  ;;  %v703_v44 = vadd.f32 1e-05, %v671_v24  ;;  %v596_v33 = vpop.xlane.xlu1 %595 }
 0x248   :  { %v641_v29 = vpop.xlane.xlu0 %640  ;;  %v837_v32 = vadd.f32 %v1604_v50, %v800_v56  ;;  %v779_v35 = vmul.f32 %v1084_v28, %v1487_v9  ;;  %1093 = vrsqrt.f32 %v722_v22  ;;  %v672_v34 = vmul.f32 0.03125, %v596_v33 }
 0x249   :  { %888 = vst.msk [vmem:[#allocation2 + $0xb8] sm:$0xff] %vm374_vm0, %v856_v27  ;;  %v801_v37 = vmul.f32 %v1598_v0, %v764_v26  ;;  %1095 = vrsqrt.f32 %v703_v44  ;;  %v687_v62 = vmul.f32 0.03125, %v641_v29 }
 0x24a   :  { %v1086_v45 = vpop.eup %1085  ;;  %869 = vst.msk [vmem:[#allocation2 + $0x20] sm:$0xff] %vm374_vm0, %v837_v32  ;;  %v816_v61 = vmul.f32 %v1598_v0, %v779_v35  ;;  %v704_v20 = vadd.f32 1e-05, %v672_v34 }
 0x24b   :  { %v1088_v40 = vpop.eup %1087  ;;  %v838_v31 = vadd.f32 %v1604_v50, %v801_v37  ;;  %v780_v51 = vmul.f32 %v1086_v45, %v1484_v10  ;;  %v719_v9 = vadd.f32 1e-05, %v687_v62  ;;  %v644_v12 = vpop.xlane.xlu1 %643 }
 0x24c   :  { %v611_v57 = vpop.xlane.xlu0 %610  ;;  %v853_v8 = vadd.f32 %v1604_v50, %v816_v61  ;;  %v769_v53 = vmul.f32 %v1088_v40, %v1500_v13  ;;  %1097 = vrsqrt.f32 %v704_v20  ;;  %v688_v60 = vmul.f32 0.03125, %v644_v12 }
 0x24d   :  { %870 = vst.msk [vmem:[#allocation2 + $0x28] sm:$0xff] %vm374_vm0, %v838_v31  ;;  %v817_v63 = vmul.f32 %v1598_v0, %v780_v51  ;;  %1099 = vrsqrt.f32 %v719_v9  ;;  %v677_v1 = vmul.f32 0.03125, %v611_v57 }
 0x24e   :  { %v1090_v4 = vpop.eup %1089  ;;  %885 = vst.msk [vmem:[#allocation2 + $0xa0] sm:$0xff] %vm374_vm0, %v853_v8  ;;  %v806_v10 = vmul.f32 %v1598_v0, %v769_v53  ;;  %v720_v5 = vadd.f32 1e-05, %v688_v60 }
 0x24f   :  { %v1092_v36 = vpop.eup %1091  ;;  %v854_v6 = vadd.f32 %v1604_v50, %v817_v63  ;;  %v770_v49 = vmul.f32 %v1090_v4, %v1497_v17  ;;  %v709_v13 = vadd.f32 1e-05, %v677_v1  ;;  %v614_v7 = vpop.xlane.xlu1 %613 }
 0x250   :  { %v605_v11 = vpop.xlane.xlu0 %604  ;;  %v843_v21 = vadd.f32 %v1604_v50, %v806_v10  ;;  %v785_v18 = vmul.f32 %v1092_v36, %v1511_v23  ;;  %1101 = vrsqrt.f32 %v720_v5  ;;  %v678_v55 = vmul.f32 0.03125, %v614_v7 }
 0x251   :  { %886 = vst.msk [vmem:[#allocation2 + $0xa8] sm:$0xff] %vm374_vm0, %v854_v6  ;;  %v807_v14 = vmul.f32 %v1598_v0, %v770_v49  ;;  %1103 = vrsqrt.f32 %v709_v13  ;;  %v675_v3 = vmul.f32 0.03125, %v605_v11 }
 0x252   :  { %v1094_v2 = vpop.eup %1093  ;;  %875 = vst.msk [vmem:[#allocation2 + $0x50] sm:$0xff] %vm374_vm0, %v843_v21  ;;  %v822_v17 = vmul.f32 %v1598_v0, %v785_v18  ;;  %v710_v43 = vadd.f32 1e-05, %v678_v55 }
 0x253   :  { %v1096_v16 = vpop.eup %1095  ;;  %v844_v19 = vadd.f32 %v1604_v50, %v807_v14  ;;  %v786_v24 = vmul.f32 %v1094_v2, %v1508_v25  ;;  %v707_v23 = vadd.f32 1e-05, %v675_v3  ;;  %v608_v39 = vpop.xlane.xlu1 %607 }
 0x254   :  { %v653_v56 = vpop.xlane.xlu0 %652  ;;  %v859_v22 = vadd.f32 %v1604_v50, %v822_v17  ;;  %v767_v28 = vmul.f32 %v1096_v16, %v1524_v48  ;;  %1105 = vrsqrt.f32 %v710_v43  ;;  %v676_v27 = vmul.f32 0.03125, %v608_v39 }
 0x255   :  { %876 = vst.msk [vmem:[#allocation2 + $0x58] sm:$0xff] %vm374_vm0, %v844_v19  ;;  %v823_v26 = vmul.f32 %v1598_v0, %v786_v24  ;;  %1107 = vrsqrt.f32 %v707_v23  ;;  %v691_v44 = vmul.f32 0.03125, %v653_v56 }
 0x256   :  { %v1098_v33 = vpop.eup %1097  ;;  %891 = vst.msk [vmem:[#allocation2 + $0xd0] sm:$0xff] %vm374_vm0, %v859_v22  ;;  %v804_v25 = vmul.f32 %v1598_v0, %v767_v28  ;;  %v708_v29 = vadd.f32 1e-05, %v676_v27 }
 0x257   :  { %v1100_v32 = vpop.eup %1099  ;;  %v860_v35 = vadd.f32 %v1604_v50, %v823_v26  ;;  %v768_v34 = vmul.f32 %v1098_v33, %v1521_v30  ;;  %v723_v48 = vadd.f32 1e-05, %v691_v44  ;;  %v656_v37 = vpop.xlane.xlu1 %655 }
 0x258   :  { %v659_v62 = vpop.xlane.xlu0 %658  ;;  %v841_v45 = vadd.f32 %v1604_v50, %v804_v25  ;;  %v783_v61 = vmul.f32 %v1100_v32, %v1535_v38  ;;  %1109 = vrsqrt.f32 %v708_v29  ;;  %v692_v20 = vmul.f32 0.03125, %v656_v37 }
 0x259   :  { %892 = vst.msk [vmem:[#allocation2 + $0xd8] sm:$0xff] %vm374_vm0, %v860_v35  ;;  %v805_v40 = vmul.f32 %v1598_v0, %v768_v34  ;;  %1111 = vrsqrt.f32 %v723_v48  ;;  %v693_v31 = vmul.f32 0.03125, %v659_v62 }
 0x25a   :  { %v1102_v51 = vpop.eup %1101  ;;  %873 = vst.msk [vmem:[#allocation2 + $0x40] sm:$0xff] %vm374_vm0, %v841_v45  ;;  %v820_v30 = vmul.f32 %v1598_v0, %v783_v61  ;;  %v724_v9 = vadd.f32 1e-05, %v692_v20 }
 0x25b   :  { %v1104_v12 = vpop.eup %1103  ;;  %v842_v57 = vadd.f32 %v1604_v50, %v805_v40  ;;  %v784_v8 = vmul.f32 %v1102_v51, %v1532_v41  ;;  %v725_v38 = vadd.f32 1e-05, %v693_v31  ;;  %v662_v53 = vpop.xlane.xlu1 %661 }
 0x25c   :  { %v857_v60 = vadd.f32 %v1604_v50, %v820_v30  ;;  %v773_v63 = vmul.f32 %v1104_v12, %v1548_v15  ;;  %1113 = vrsqrt.f32 %v724_v9  ;;  %v694_v1 = vmul.f32 0.03125, %v662_v53 }
 0x25d   :  { %874 = vst.msk [vmem:[#allocation2 + $0x48] sm:$0xff] %vm374_vm0, %v842_v57  ;;  %v821_v4 = vmul.f32 %v1598_v0, %v784_v8  ;;  %1115 = vrsqrt.f32 %v725_v38 }
 0x25e   :  { %v1106_v10 = vpop.eup %1105  ;;  %889 = vst.msk [vmem:[#allocation2 + $0xc0] sm:$0xff] %vm374_vm0, %v857_v60  ;;  %v810_v5 = vmul.f32 %v1598_v0, %v773_v63  ;;  %v726_v36 = vadd.f32 1e-05, %v694_v1 }
 0x25f   :  { %v1108_v41 = vpop.eup %1107  ;;  %v858_v6 = vadd.f32 %v1604_v50, %v821_v4  ;;  %v774_v49 = vmul.f32 %v1106_v10, %v1545_v42 }
 0x260   :  { %v847_v15 = vadd.f32 %v1604_v50, %v810_v5  ;;  %v771_v13 = vmul.f32 %v1108_v41, %v1559_v46  ;;  %1117 = vrsqrt.f32 %v726_v36 }
 0x261   :  { %890 = vst.msk [vmem:[#allocation2 + $0xc8] sm:$0xff] %vm374_vm0, %v858_v6  ;;  %v811_v7 = vmul.f32 %v1598_v0, %v774_v49 }
 0x262   :  { %v1110_v11 = vpop.eup %1109  ;;  %879 = vst.msk [vmem:[#allocation2 + $0x70] sm:$0xff] %vm374_vm0, %v847_v15  ;;  %v808_v21 = vmul.f32 %v1598_v0, %v771_v13 }
 0x263   :  { %v1112_v18 = vpop.eup %1111  ;;  %v848_v55 = vadd.f32 %v1604_v50, %v811_v7  ;;  %v772_v14 = vmul.f32 %v1110_v11, %v1556_v47 }
 0x264   :  { %v845_v42 = vadd.f32 %v1604_v50, %v808_v21  ;;  %v787_v3 = vmul.f32 %v1112_v18, %v1572_v52 }
 0x265   :  { %880 = vst.msk [vmem:[#allocation2 + $0x78] sm:$0xff] %vm374_vm0, %v848_v55  ;;  %v809_v46 = vmul.f32 %v1598_v0, %v772_v14 }
 0x266   :  { %v1114_v2 = vpop.eup %1113  ;;  %877 = vst.msk [vmem:[#allocation2 + $0x60] sm:$0xff] %vm374_vm0, %v845_v42  ;;  %v824_v17 = vmul.f32 %v1598_v0, %v787_v3 }
 0x267   :  { %v1116_v43 = vpop.eup %1115  ;;  %v846_v16 = vadd.f32 %v1604_v50, %v809_v46  ;;  %v788_v19 = vmul.f32 %v1114_v2, %v1569_v54 }
 0x268   :  { %v861_v47 = vadd.f32 %v1604_v50, %v824_v17  ;;  %v789_v24 = vmul.f32 %v1116_v43, %v1583_v58 }
 0x269   :  { %878 = vst.msk [vmem:[#allocation2 + $0x68] sm:$0xff] %vm374_vm0, %v846_v16  ;;  %v825_v52 = vmul.f32 %v1598_v0, %v788_v19 }
 0x26a   :  { %v1118_v23 = vpop.eup %1117  ;;  %893 = vst.msk [vmem:[#allocation2 + $0xe0] sm:$0xff] %vm374_vm0, %v861_v47  ;;  %v826_v39 = vmul.f32 %v1598_v0, %v789_v24 }
 0x26b   :  { %v862_v56 = vadd.f32 %v1604_v50, %v825_v52  ;;  %v790_v22 = vmul.f32 %v1118_v23, %v1580_v59 }
 0x26c   :  { %v863_v28 = vadd.f32 %v1604_v50, %v826_v39 }
 0x26d   :  { %894 = vst.msk [vmem:[#allocation2 + $0xe8] sm:$0xff] %vm374_vm0, %v862_v56  ;;  %v827_v54 = vmul.f32 %v1598_v0, %v790_v22 }
 0x26e   :  { %895 = vst.msk [vmem:[#allocation2 + $0xf0] sm:$0xff] %vm374_vm0, %v863_v28 }
 0x26f   :  { %v864_v58 = vadd.f32 %v1604_v50, %v827_v54 }
 0x271   :  { %896 = vst.msk [vmem:[#allocation2 + $0xf8] sm:$0xff] %vm374_vm0, %v864_v58 }
 0x272   :  { %1130 = shalt.err (!%p1127_p4)
}
 0x273   :  { %s1131_s13 = scalar_lea.hbm %s1748_s3, 4096 }
 0x274   :  { %p1132_p5 = scmp.ne.s32.totalorder %s1748_s3, %s1131_s13  ;;  %p1135_p6 = scmp.lt.u32.totalorder %s1131_s13, %s1748_s3 }
 0x276   :  { %p1137_p7 = pnand %p1135_p6, %p1132_p5 }
 0x278   :  { %1140 = shalt.err (!%p1137_p7)
}
 0x279   :  { %s1144_s18 = smov 128   ;;  %s1145_s19 = smov 8  }
 0x27a   :  { %908 = dma.vmem_to_hbm [thread:$0]  %s903_s10, 4096, %s1748_s3, [#allocation3], %s1144_s18, %s1144_s18, %s1145_s19  }
 0x27b   :  { %1141 = dma.done.wait [#allocation3], 4096  }
 0x27c   :  { %1142 = vsyncadd [#allocation3], 4294963200 }
 0x27d   :  { %912 = vsyncpa [#allocation3], 1 }

</bundles_post_ra>
